<compile_context>
chip_gen: v5e
topology: v5e:2x2
jax: 0.10.0
libtpu: 0.0.40
codegen_flags: <defaults>
</compile_context>

<pallas_src>
import functools

import jax
import jax.numpy as jnp
from jax.experimental import pallas as pl
from jax.experimental.pallas import tpu as pltpu


def _cnn_kernel(x_ref, w_ref, b_ref, o_ref, slab_ref, *, L, L_pad, K, C):
    """Fused Conv1d -> bias -> ReLU -> global MaxPool.

    x_ref   : (B, W, C)        channel-last input
    w_ref   : (K*C, F)         conv weight, k-major contraction rows, F on lanes
    b_ref   : (1, F)           bias, lane-major
    o_ref   : (B, F)           pooled output, F on lanes
    slab_ref: (B*L_pad, K*C)   f32 scratch -- im2col slab built in-kernel
    """
    B = x_ref.shape[0]
    F = w_ref.shape[1]

    # Build the im2col slab in VMEM (no HBM roundtrip of the unfolded input).
    # Padded rows (l in [L, L_pad)) stay zero -> evaluate to relu(bias); they are
    # masked to -inf before the max (correctness concern from the review).
    slab_ref[...] = jnp.zeros_like(slab_ref)
    for b in range(B):                     # static trip counts (B, K are tiny)
        for k in range(K):
            slab_ref[b * L_pad:b * L_pad + L, k * C:(k + 1) * C] = x_ref[b, k:k + L, :]

    # ONE merged-batch MXU matmul: (B*L_pad, K*C) @ (K*C, F) with f32 accumulation.
    conv = jnp.dot(slab_ref[...], w_ref[...], preferred_element_type=jnp.float32)
    act = jnp.maximum(conv + b_ref[...], 0.0)          # bias + ReLU on one slab

    # Sublane-aligned view (L_pad % 8 == 0): (B*L_pad, F) -> (B, L_pad, F), no copy.
    act = act.reshape(B, L_pad, F)
    l_idx = jax.lax.broadcasted_iota(jnp.int32, act.shape, 1)
    act = jnp.where(l_idx < L, act, -jnp.inf)          # mask padded rows
    o_ref[...] = jnp.max(act, axis=1).astype(o_ref.dtype)   # (B, F) lane-major store


def make_cnn_forward(weight, bias, *, kernel_size):
    """Hoists weight/bias layout prep out of the per-call path; returns jitted forward."""
    F, C_in, K = weight.shape
    assert K == kernel_size
    # k-major contraction rows to match the in-kernel slab: w_mat[k*C + c, f] = weight[f, c, k]
    w_mat = jnp.transpose(weight, (2, 1, 0)).reshape(K * C_in, F)
    bias_row = bias.reshape(1, F)

    @jax.jit
    def forward(x):
        B, C, W = x.shape
        assert C == C_in
        L = W - K + 1
        L_pad = ((L + 7) // 8) * 8          # sublane-aligned per-batch row count

        x_t = jnp.transpose(x, (0, 2, 1))   # (B, W, C) channel-last, ~5 KB

        kernel = functools.partial(_cnn_kernel, L=L, L_pad=L_pad, K=K, C=C_in)

        # Gridless single invocation: ~80 KB working set, trivially VMEM-resident.
        # TODO(synk): for large B on v7x, add a 1-D grid over B with
        #   dimension_semantics=("parallel",) to use both TensorCores.
        # TODO(synk): on v5e, casting x_t/w_mat to bfloat16 (keeping f32
        #   accumulation via preferred_element_type) ~doubles MXU rate at ~1e-2
        #   tolerance; kept f32 here for exactness.
        return pl.pallas_call(
            kernel,
            out_shape=jax.ShapeDtypeStruct((B, F), jnp.float32),
            in_specs=[
                pl.BlockSpec(memory_space=pltpu.MemorySpace.VMEM),   # x_t
                pl.BlockSpec(memory_space=pltpu.MemorySpace.VMEM),   # w_mat
                pl.BlockSpec(memory_space=pltpu.MemorySpace.VMEM),   # bias_row
            ],
            out_specs=pl.BlockSpec(memory_space=pltpu.MemorySpace.VMEM),
            scratch_shapes=[pltpu.VMEM((B * L_pad, K * C_in), jnp.float32)],
        )(x_t, w_mat, bias_row)

    return forward


def _reference(x, weight, bias):
    """Pure-JAX reference of the PyTorch forward (for correctness check)."""
    B, C_in, W = x.shape
    F, _, K = weight.shape
    L = W - K + 1
    cols = jnp.stack([x[:, :, t:t + L] for t in range(K)], axis=-1)   # (B, C, L, K)
    cols = cols.transpose(0, 2, 1, 3).reshape(B, L, C_in * K)
    wmat = weight.reshape(F, C_in * K)
    conv = jnp.einsum("blc,fc->bfl", cols, wmat) + bias[None, :, None]
    return jnp.max(jnp.maximum(conv, 0.0), axis=-1)                    # (B, F)


if __name__ == "__main__":
    # Module hyper-params (small, consistent with the PyTorch __init__).
    batch = 2
    embed_size = 32     # in_channels
    max_word = 21       # input width
    kernel_size = 5
    feature = 64        # out_channels

    key = jax.random.PRNGKey(0)
    kx, kw, kb = jax.random.split(key, 3)
    x = jax.random.normal(kx, (batch, embed_size, max_word), dtype=jnp.float32)
    weight = 0.1 * jax.random.normal(kw, (feature, embed_size, kernel_size), dtype=jnp.float32)
    bias = 0.1 * jax.random.normal(kb, (feature,), dtype=jnp.float32)

    forward = make_cnn_forward(weight, bias, kernel_size=kernel_size)
    out = jax.block_until_ready(forward(x))

    ref = _reference(x, weight, bias)
    assert out.shape == (batch, feature)
    assert jnp.allclose(out, ref, atol=1e-4, rtol=1e-4), "mismatch vs reference"

    print("KERNEL_OK")
</pallas_src>

<mosaic_0001>
module attributes {stable_mosaic.version = 11 : i64} {
  func.func @_cnn_kernel(%arg0: memref<2x21x32xf32, #tpu.memory_space<vmem>>, %arg1: memref<160x64xf32, #tpu.memory_space<vmem>>, %arg2: memref<1x64xf32, #tpu.memory_space<vmem>>, %arg3: memref<2x64xf32, #tpu.memory_space<vmem>>, %arg4: memref<48x160xf32, #tpu.memory_space<vmem>>) attributes {dimension_semantics = [], scalar_prefetch = 0 : i64, scratch_operands = 1 : i64, tpu.core_type = #tpu.core_type<tc>} {
    %cst = arith.constant 0.000000e+00 : f32
    %0 = vector.broadcast %cst : f32 to vector<48x160xf32>
    %c0 = arith.constant 0 : index
    %c0_0 = arith.constant 0 : index
    %1 = vector.load %arg4[%c0, %c0_0] : memref<48x160xf32, #tpu.memory_space<vmem>>, vector<48x160xf32>
    tpu.vector_store %arg4[%c0, %c0_0], %0 {strides = array<i32>} : memref<48x160xf32, #tpu.memory_space<vmem>>, vector<48x160xf32>,
    %c0_1 = arith.constant 0 : index
    %c0_2 = arith.constant 0 : index
    %c0_3 = arith.constant 0 : index
    %2 = vector.load %arg0[%c0_1, %c0_2, %c0_3] : memref<2x21x32xf32, #tpu.memory_space<vmem>>, vector<1x17x32xf32>
    %3 = vector.shape_cast %2 : vector<1x17x32xf32> to vector<17x32xf32>
    %c0_4 = arith.constant 0 : index
    %c0_5 = arith.constant 0 : index
    %4 = vector.load %arg4[%c0_4, %c0_5] : memref<48x160xf32, #tpu.memory_space<vmem>>, vector<17x32xf32>
    tpu.vector_store %arg4[%c0_4, %c0_5], %3 {strides = array<i32>} : memref<48x160xf32, #tpu.memory_space<vmem>>, vector<17x32xf32>,
    %c0_6 = arith.constant 0 : index
    %c1 = arith.constant 1 : index
    %c0_7 = arith.constant 0 : index
    %5 = vector.load %arg0[%c0_6, %c1, %c0_7] : memref<2x21x32xf32, #tpu.memory_space<vmem>>, vector<1x17x32xf32>
    %6 = vector.shape_cast %5 : vector<1x17x32xf32> to vector<17x32xf32>
    %c0_8 = arith.constant 0 : index
    %c32 = arith.constant 32 : index
    %7 = vector.load %arg4[%c0_8, %c32] : memref<48x160xf32, #tpu.memory_space<vmem>>, vector<17x32xf32>
    tpu.vector_store %arg4[%c0_8, %c32], %6 {strides = array<i32>} : memref<48x160xf32, #tpu.memory_space<vmem>>, vector<17x32xf32>,
    %c0_9 = arith.constant 0 : index
    %c2 = arith.constant 2 : index
    %c0_10 = arith.constant 0 : index
    %8 = vector.load %arg0[%c0_9, %c2, %c0_10] : memref<2x21x32xf32, #tpu.memory_space<vmem>>, vector<1x17x32xf32>
    %9 = vector.shape_cast %8 : vector<1x17x32xf32> to vector<17x32xf32>
    %c0_11 = arith.constant 0 : index
    %c64 = arith.constant 64 : index
    %10 = vector.load %arg4[%c0_11, %c64] : memref<48x160xf32, #tpu.memory_space<vmem>>, vector<17x32xf32>
    tpu.vector_store %arg4[%c0_11, %c64], %9 {strides = array<i32>} : memref<48x160xf32, #tpu.memory_space<vmem>>, vector<17x32xf32>,
    %c0_12 = arith.constant 0 : index
    %c3 = arith.constant 3 : index
    %c0_13 = arith.constant 0 : index
    %11 = vector.load %arg0[%c0_12, %c3, %c0_13] : memref<2x21x32xf32, #tpu.memory_space<vmem>>, vector<1x17x32xf32>
    %12 = vector.shape_cast %11 : vector<1x17x32xf32> to vector<17x32xf32>
    %c0_14 = arith.constant 0 : index
    %c96 = arith.constant 96 : index
    %13 = vector.load %arg4[%c0_14, %c96] : memref<48x160xf32, #tpu.memory_space<vmem>>, vector<17x32xf32>
    tpu.vector_store %arg4[%c0_14, %c96], %12 {strides = array<i32>} : memref<48x160xf32, #tpu.memory_space<vmem>>, vector<17x32xf32>,
    %c0_15 = arith.constant 0 : index
    %c4 = arith.constant 4 : index
    %c0_16 = arith.constant 0 : index
    %14 = vector.load %arg0[%c0_15, %c4, %c0_16] : memref<2x21x32xf32, #tpu.memory_space<vmem>>, vector<1x17x32xf32>
    %15 = vector.shape_cast %14 : vector<1x17x32xf32> to vector<17x32xf32>
    %c0_17 = arith.constant 0 : index
    %c128 = arith.constant 128 : index
    %16 = vector.load %arg4[%c0_17, %c128] : memref<48x160xf32, #tpu.memory_space<vmem>>, vector<17x32xf32>
    tpu.vector_store %arg4[%c0_17, %c128], %15 {strides = array<i32>} : memref<48x160xf32, #tpu.memory_space<vmem>>, vector<17x32xf32>,
    %c1_18 = arith.constant 1 : index
    %c0_19 = arith.constant 0 : index
    %c0_20 = arith.constant 0 : index
    %17 = vector.load %arg0[%c1_18, %c0_19, %c0_20] : memref<2x21x32xf32, #tpu.memory_space<vmem>>, vector<1x17x32xf32>
    %18 = vector.shape_cast %17 : vector<1x17x32xf32> to vector<17x32xf32>
    %c24 = arith.constant 24 : index
    %c0_21 = arith.constant 0 : index
    %19 = vector.load %arg4[%c24, %c0_21] : memref<48x160xf32, #tpu.memory_space<vmem>>, vector<17x32xf32>
    tpu.vector_store %arg4[%c24, %c0_21], %18 {strides = array<i32>} : memref<48x160xf32, #tpu.memory_space<vmem>>, vector<17x32xf32>,
    %c1_22 = arith.constant 1 : index
    %c1_23 = arith.constant 1 : index
    %c0_24 = arith.constant 0 : index
    %20 = vector.load %arg0[%c1_22, %c1_23, %c0_24] : memref<2x21x32xf32, #tpu.memory_space<vmem>>, vector<1x17x32xf32>
    %21 = vector.shape_cast %20 : vector<1x17x32xf32> to vector<17x32xf32>
    %c24_25 = arith.constant 24 : index
    %c32_26 = arith.constant 32 : index
    %22 = vector.load %arg4[%c24_25, %c32_26] : memref<48x160xf32, #tpu.memory_space<vmem>>, vector<17x32xf32>
    tpu.vector_store %arg4[%c24_25, %c32_26], %21 {strides = array<i32>} : memref<48x160xf32, #tpu.memory_space<vmem>>, vector<17x32xf32>,
    %c1_27 = arith.constant 1 : index
    %c2_28 = arith.constant 2 : index
    %c0_29 = arith.constant 0 : index
    %23 = vector.load %arg0[%c1_27, %c2_28, %c0_29] : memref<2x21x32xf32, #tpu.memory_space<vmem>>, vector<1x17x32xf32>
    %24 = vector.shape_cast %23 : vector<1x17x32xf32> to vector<17x32xf32>
    %c24_30 = arith.constant 24 : index
    %c64_31 = arith.constant 64 : index
    %25 = vector.load %arg4[%c24_30, %c64_31] : memref<48x160xf32, #tpu.memory_space<vmem>>, vector<17x32xf32>
    tpu.vector_store %arg4[%c24_30, %c64_31], %24 {strides = array<i32>} : memref<48x160xf32, #tpu.memory_space<vmem>>, vector<17x32xf32>,
    %c1_32 = arith.constant 1 : index
    %c3_33 = arith.constant 3 : index
    %c0_34 = arith.constant 0 : index
    %26 = vector.load %arg0[%c1_32, %c3_33, %c0_34] : memref<2x21x32xf32, #tpu.memory_space<vmem>>, vector<1x17x32xf32>
    %27 = vector.shape_cast %26 : vector<1x17x32xf32> to vector<17x32xf32>
    %c24_35 = arith.constant 24 : index
    %c96_36 = arith.constant 96 : index
    %28 = vector.load %arg4[%c24_35, %c96_36] : memref<48x160xf32, #tpu.memory_space<vmem>>, vector<17x32xf32>
    tpu.vector_store %arg4[%c24_35, %c96_36], %27 {strides = array<i32>} : memref<48x160xf32, #tpu.memory_space<vmem>>, vector<17x32xf32>,
    %c1_37 = arith.constant 1 : index
    %c4_38 = arith.constant 4 : index
    %c0_39 = arith.constant 0 : index
    %29 = vector.load %arg0[%c1_37, %c4_38, %c0_39] : memref<2x21x32xf32, #tpu.memory_space<vmem>>, vector<1x17x32xf32>
    %30 = vector.shape_cast %29 : vector<1x17x32xf32> to vector<17x32xf32>
    %c24_40 = arith.constant 24 : index
    %c128_41 = arith.constant 128 : index
    %31 = vector.load %arg4[%c24_40, %c128_41] : memref<48x160xf32, #tpu.memory_space<vmem>>, vector<17x32xf32>
    tpu.vector_store %arg4[%c24_40, %c128_41], %30 {strides = array<i32>} : memref<48x160xf32, #tpu.memory_space<vmem>>, vector<17x32xf32>,
    %c0_42 = arith.constant 0 : index
    %c0_43 = arith.constant 0 : index
    %32 = vector.load %arg4[%c0_42, %c0_43] : memref<48x160xf32, #tpu.memory_space<vmem>>, vector<48x160xf32>
    %c0_44 = arith.constant 0 : index
    %c0_45 = arith.constant 0 : index
    %33 = vector.load %arg1[%c0_44, %c0_45] : memref<160x64xf32, #tpu.memory_space<vmem>>, vector<160x64xf32>
    %cst_46 = arith.constant dense<0.000000e+00> : vector<48x64xf32>
    %34 = tpu.matmul %32, %33, %cst_46 {dimension_numbers = #tpu.dot_dimension_numbers<[1], [0], [0], [1], [0, 0, 1, 1], [], []>} : vector<48x160xf32>, vector<160x64xf32>, vector<48x64xf32> -> vector<48x64xf32>
    %c0_47 = arith.constant 0 : index
    %c0_48 = arith.constant 0 : index
    %35 = vector.load %arg2[%c0_47, %c0_48] : memref<1x64xf32, #tpu.memory_space<vmem>>, vector<1x64xf32>
    %36 = vector.broadcast %35 : vector<1x64xf32> to vector<48x64xf32>
    %37 = arith.addf %34, %36 : vector<48x64xf32>
    %cst_49 = arith.constant 0.000000e+00 : f32
    %38 = vector.broadcast %cst_49 : f32 to vector<48x64xf32>
    %39 = arith.maximumf %37, %38 : vector<48x64xf32>
    %40 = vector.shape_cast %39 : vector<48x64xf32> to vector<2x24x64xf32>
    %41 = tpu.iota {dimensions = array<i32: 1>} : vector<2x24x64xi32>
    %c17_i32 = arith.constant 17 : i32
    %42 = vector.broadcast %c17_i32 : i32 to vector<2x24x64xi32>
    %43 = arith.cmpi slt, %41, %42 : vector<2x24x64xi32>
    %cst_50 = arith.constant 0xFF800000 : f32
    %44 = vector.broadcast %cst_50 : f32 to vector<2x24x64xf32>
    %45 = arith.select %43, %40, %44 : vector<2x24x64xi1>, vector<2x24x64xf32>
    %cst_51 = arith.constant dense<0xFF800000> : vector<2x64xf32>
    %46 = vector.multi_reduction <maximumf>, %45, %cst_51 [1] : vector<2x24x64xf32> to vector<2x64xf32>
    %c0_52 = arith.constant 0 : index
    %c0_53 = arith.constant 0 : index
    %47 = vector.load %arg3[%c0_52, %c0_53] : memref<2x64xf32, #tpu.memory_space<vmem>>, vector<2x64xf32>
    tpu.vector_store %arg3[%c0_52, %c0_53], %46 {strides = array<i32>} : memref<2x64xf32, #tpu.memory_space<vmem>>, vector<2x64xf32>,
    return
  }
}

</mosaic_0001>

<bundles_post_ra>
// kernel: forward.1
= control target key start
LH: loop header
LB: loop body
LE: loop exit
PB: predicated region body
PF: predicated region fallthrough
CT: control target
= control target key end

     0   :  { %8 = vsyncpa [#allocation4], 0  ;;  %s675_s0 = inlined_call_operand.vmem [shape: f32[2,21,32], index: 0, kind: input, shape index: {}]   ;;  %s676_s1 = inlined_call_operand.hbm [shape: f32[160,64], index: 1, kind: input, shape index: {}]   ;;  %s677_s2 = inlined_call_operand.vmem [shape: f32[1,64], index: 2, kind: input, shape index: {}]   ;;  %s678_s3 = inlined_call_operand.hbm [shape: f32[2,64], index: 3, kind: output, shape index: {}]  }
   0x1   :  { %9 = vsyncpa [#allocation5], 0  ;;  %s16_s14 = sshll.u32 %s676_s1, 4  ;;  %s488_s15 = smov [#allocation3]   ;;  %s17_s14 = int_to_ptr.hbm [resolvable:$true] %s16_s14 }
   0x2   :  { %s18_s16 = sshll.u32 %s488_s15, 4  ;;  %s489_s17 = smov 128   ;;  %s19_s16 = int_to_ptr.vmem [resolvable:$true] %s18_s16 }
   0x3   :  { %s490_s18 = smov 8  }
   0x4   :  { %24 = dma.hbm_to_vmem [thread:$0]  %s17_s14, 2560, %s19_s16, [#allocation4], %s489_s17, %s489_s17, %s490_s18  }
   0x5   :  { %484 = dma.done.wait [#allocation4], 2560  }
   0x6   :  { %485 = vsyncadd [#allocation4], 4294964736  ;;  %v383_v0 = vld [vmem:[%s675_s0 + $0x1b] sm:$0xff]  ;;  %s491_s1 = smov 96   ;;  %s492_s25 = smov 64   ;;  %v384_v3 = vld [vmem:[%s675_s0 + $0x23] sm:$0xff] }
   0x7   :  { %v381_v1 = vld [vmem:[%s675_s0 + $0x22] sm:$0xff]  ;;  %v377_v2 = vld [vmem:[%s675_s0 + $0x19] sm:$0xff]  ;;  %166 = vrot.lane.b32.xlu1 %v383_v0, %s491_s1  ;;  %s493_s26 = smov 32   ;;  %v53_v8 = vld [vmem:[%s675_s0 + $0x11] sm:$0x1]  ;;  %vm32_vm0 = vcmask 261120  }
   0x8   :  { %150 = vrot.lane.b32.xlu2 %v381_v1, %s492_s25  ;;  %130 = vrot.lane.b32.xlu0 %v377_v2, %s493_s26  ;;  %v378_v4 = vld [vmem:[%s675_s0 + $0x21] sm:$0xff]  ;;  %v379_v6 = vld [vmem:[%s675_s0 + $0x29] sm:$0x1]  ;;  %v211_v18 = vld [vmem:[#allocation3 + $0x78] sm:$0xff]  ;;  %v494_v20 = vmov 0.0   ;;  %vm49_vm1 = vcmask 253952  }
   0x9   :  { %v380_v5 = vld [vmem:[%s675_s0 + $0x1a] sm:$0xff]  ;;  %v382_v9 = vld [vmem:[%s675_s0 + $0x2a] sm:$0x1]  ;;  %v71_v10 = vld [vmem:[%s675_s0 + $0x2] sm:$0xff]  ;;  %238 = vmatpush.msra.mxu0 %v211_v18  ;;  %396 = vmatpush.msra.mxu3 %v211_v18  ;;  %31 = vst [vmem:[#allocation2] sm:$0xff] %v494_v20  ;;  %vm66_vm2 = vcmask 523520  }
   0xa   :  { %v51_v7 = vld [vmem:[%s675_s0 + $0x1] sm:$0xff]  ;;  %v73_v11 = vld [vmem:[%s675_s0 + $0x12] sm:$0x1]  ;;  %v385_v12 = vld [vmem:[%s675_s0 + $0x2b] sm:$0x1]  ;;  %33 = vst.msk [vmem:[#allocation2 + $0x8] sm:$0xff] %vm32_vm0, %v494_v20  ;;  %395 = vmatpush.msra.mxu2 %v211_v18 }
   0xb   :  { %v91_v13 = vld [vmem:[%s675_s0 + $0x3] sm:$0xff]  ;;  %v93_v14 = vld [vmem:[%s675_s0 + $0x13] sm:$0x1]  ;;  %v92_v16 = vld [vmem:[%s675_s0 + $0xb] sm:$0xff]  ;;  %34 = vst [vmem:[#allocation2 + $0x10] sm:$0xff] %v494_v20  ;;  %vm86_vm3 = vcmask 785920  }
   0xc   :  { %v72_v15 = vld [vmem:[%s675_s0 + $0xa] sm:$0xff]  ;;  %v208_v22 = vld [vmem:[#allocation3 + $0x60] sm:$0xff]  ;;  %35 = vst.msk [vmem:[#allocation2 + $0x18] sm:$0xff] %vm32_vm0, %v494_v20  ;;  %v207_v24 = vld [vmem:[#allocation3 + $0x58] sm:$0xff]  ;;  %vm106_vm4 = vcmask 1048320   ;;  %vm69_vm5 = vcmask 516352  }
   0xd   :  { %v52_v17 = vld [vmem:[%s675_s0 + $0x9] sm:$0xff]  ;;  %36 = vst [vmem:[#allocation2 + $0x20] sm:$0xff] %v494_v20  ;;  %v44_v23 = vld [vmem:[%s675_s0] sm:$0xff]  ;;  %v215_v25 = vld [vmem:[#allocation3 + $0x98] sm:$0xff]  ;;  %vm89_vm6 = vcmask 778752   ;;  %vm109_vm7 = vcmask 1041152  }
   0xe   :  { %v210_v19 = vld [vmem:[#allocation3 + $0x70] sm:$0xff]  ;;  %v209_v21 = vld [vmem:[#allocation3 + $0x68] sm:$0xff]  ;;  %37 = vst.msk [vmem:[#allocation2 + $0x28] sm:$0xff] %vm32_vm0, %v494_v20  ;;  %285 = vmatpush.msra.mxu1 %v215_v25  ;;  %v204_v31 = vld [vmem:[#allocation3 + $0x40] sm:$0xff]  ;;  %vm327_vm9 = vcmask 523264   ;;  %vm352_vm10 = vcmask 1041409  }
   0xf   :  { %132 = vrot.lane.b32.xlu1 %v378_v4, %s493_s26  ;;  %239 = vmatpush.msra.mxu0 %v210_v19  ;;  %38 = vst [vmem:[#allocation2 + $0x30] sm:$0xff] %v494_v20  ;;  %v206_v26 = vld [vmem:[#allocation3 + $0x50] sm:$0xff]  ;;  %v205_v28 = vld [vmem:[#allocation3 + $0x48] sm:$0xff]  ;;  %v374_v32 = vld [vmem:[%s675_s0 + $0x18] sm:$0xff]  ;;  %vm355_vm11 = vcmask 517120  }
  0x10   :  { %168 = vrot.lane.b32.xlu2 %v384_v3, %s491_s1  ;;  %148 = vrot.lane.b32.xlu0 %v380_v5, %s492_s25  ;;  %39 = vst.msk [vmem:[#allocation2 + $0x38] sm:$0xff] %vm32_vm0, %v494_v20  ;;  %v214_v27 = vld [vmem:[#allocation3 + $0x90] sm:$0xff]  ;;  %v111_v29 = vld [vmem:[%s675_s0 + $0x4] sm:$0xff]  ;;  %v203_v34 = vld [vmem:[#allocation3 + $0x38] sm:$0xff] }
  0x11   :  { %398 = vmatpush.msra.mxu3 %v210_v19  ;;  %397 = vmatpush.msra.mxu2 %v210_v19  ;;  %47 = vst.msk [vmem:[#allocation2] sm:$0xff] %vm32_vm0, %v44_v23  ;;  %v213_v30 = vld [vmem:[#allocation3 + $0x88] sm:$0xff]  ;;  %v212_v33 = vld [vmem:[#allocation3 + $0x80] sm:$0xff]  ;;  %v202_v35 = vld [vmem:[#allocation3 + $0x30] sm:$0xff] }
  0x12   :  { %240 = vmatpush.msra.mxu0 %v209_v21  ;;  %40 = vst [vmem:[#allocation2 + $0x40] sm:$0xff] %v494_v20  ;;  %286 = vmatpush.msra.mxu1 %v214_v27  ;;  %v201_v36 = vld [vmem:[#allocation3 + $0x28] sm:$0xff]  ;;  %v200_v38 = vld [vmem:[#allocation3 + $0x20] sm:$0xff]  ;;  %v199_v42 = vld [vmem:[#allocation3 + $0x18] sm:$0xff] }
  0x13   :  { %400 = vmatpush.msra.mxu3 %v209_v21  ;;  %399 = vmatpush.msra.mxu2 %v209_v21  ;;  %41 = vst.msk [vmem:[#allocation2 + $0x48] sm:$0xff] %vm32_vm0, %v494_v20  ;;  %v112_v39 = vld [vmem:[%s675_s0 + $0xc] sm:$0xff]  ;;  %v375_v41 = vld [vmem:[%s675_s0 + $0x20] sm:$0xff]  ;;  %v113_v48 = vld [vmem:[%s675_s0 + $0x14] sm:$0x1] }
  0x14   :  { %241 = vmatpush.msra.mxu0 %v208_v22  ;;  %42 = vst [vmem:[#allocation2 + $0x50] sm:$0xff] %v494_v20  ;;  %287 = vmatpush.msra.mxu1 %v213_v30  ;;  %v198_v44 = vld [vmem:[#allocation3 + $0x10] sm:$0xff]  ;;  %v197_v45 = vld [vmem:[#allocation3 + $0x8] sm:$0xff]  ;;  %v196_v51 = vld [vmem:[#allocation3] sm:$0xff] }
  0x15   :  { %402 = vmatpush.msra.mxu3 %v208_v22  ;;  %401 = vmatpush.msra.mxu2 %v208_v22  ;;  %43 = vst.msk [vmem:[#allocation2 + $0x58] sm:$0xff] %vm32_vm0, %v494_v20  ;;  %v388_v46 = vld [vmem:[%s675_s0 + $0x2c] sm:$0x1]  ;;  %v376_v49 = vld [vmem:[%s675_s0 + $0x28] sm:$0x1]  ;;  %v386_v52 = vld [vmem:[%s675_s0 + $0x1c] sm:$0xff] }
  0x16   :  { %242 = vmatpush.msra.mxu0 %v207_v24  ;;  %114 = vst.msk [vmem:[#allocation2 + $0x8] sm:$0xff] %vm32_vm0, %v111_v29  ;;  %288 = vmatpush.msra.mxu1 %v212_v33  ;;  %v46_v50 = vld [vmem:[%s675_s0 + $0x10] sm:$0x1]  ;;  %v387_v56 = vld [vmem:[%s675_s0 + $0x24] sm:$0xff]  ;;  %v435_v25 = vld [vmem:[%s677_s2] ss:$0 sm:$0xff] }
  0x17   :  { %134 = vrot.lane.b32.xlu1 %v379_v6, %s493_s26  ;;  %404 = vmatpush.msra.mxu3 %v207_v24  ;;  %121 = vst.msk [vmem:[#allocation2 + $0x30] sm:$0xff] %vm32_vm0, %v374_v32  ;;  %v45_v0 = vld [vmem:[%s675_s0 + $0x8] sm:$0xff]  ;;  %s495_s2 = smov [#allocation6]  }
  0x18   :  { %57 = vrot.lane.b32.xlu2 %v51_v7, %s493_s26  ;;  %61 = vrot.lane.b32.xlu0 %v53_v8, %s493_s26  ;;  %115 = vst.msk [vmem:[#allocation2 + $0x18] sm:$0xff] %vm32_vm0, %v112_v39  ;;  %s362_s29 = sshll.u32 %s495_s2, 4  ;;  %s363_s29 = int_to_ptr.vmem [resolvable:$true] %s362_s29 }
  0x19   :  { %403 = vmatpush.msra.mxu2 %v207_v24  ;;  %243 = vmatpush.msra.mxu0 %v206_v26  ;;  %122 = vst.msk [vmem:[#allocation2 + $0x40] sm:$0xff] %vm32_vm0, %v375_v41  ;;  %v314_v24 = vlaneseq }
  0x1a   :  { %406 = vmatpush.msra.mxu3 %v206_v26  ;;  %183 = vst.msk [vmem:[#allocation2 + $0x58] sm:$0x1] %vm49_vm1, %v388_v46 }
  0x1b   :  { %405 = vmatpush.msra.mxu2 %v206_v26  ;;  %244 = vmatpush.msra.mxu0 %v205_v28  ;;  %116 = vst.msk [vmem:[#allocation2 + $0x28] sm:$0x1] %vm49_vm1, %v113_v48 }
  0x1c   :  { %408 = vmatpush.msra.mxu3 %v205_v28  ;;  %123 = vst.msk [vmem:[#allocation2 + $0x50] sm:$0x1] %vm49_vm1, %v376_v49 }
  0x1d   :  { %407 = vmatpush.msra.mxu2 %v205_v28  ;;  %245 = vmatpush.msra.mxu0 %v204_v31  ;;  %v185_v37 = vld [vmem:[#allocation2 + $0x8] sm:$0xff]  ;;  %50 = vst.msk [vmem:[#allocation2 + $0x20] sm:$0x1] %vm49_vm1, %v46_v50  ;;  %v315_v28 = vshrl.u32 %v314_v24, 7 }
  0x1e   :  { %410 = vmatpush.msra.mxu3 %v204_v31  ;;  %389 = vmatmul.msk.f32.vlgmr.msra.gmra.mxu1 %vm32_vm0, %v185_v37  ;;  %181 = vst.msk [vmem:[#allocation2 + $0x38] sm:$0xff] %vm32_vm0, %v386_v52 }
  0x1f   :  { %152 = vrot.lane.b32.xlu1 %v382_v9, %s492_s25  ;;  %409 = vmatpush.msra.mxu2 %v204_v31  ;;  %v187_v43 = vld [vmem:[#allocation2 + $0x18] sm:$0xff]  ;;  %182 = vst.msk [vmem:[#allocation2 + $0x48] sm:$0xff] %vm32_vm0, %v387_v56 }
  0x20   :  { %77 = vrot.lane.b32.xlu2 %v71_v10, %s492_s25  ;;  %81 = vrot.lane.b32.xlu0 %v73_v11, %s492_s25  ;;  %48 = vst.msk [vmem:[#allocation2 + $0x10] sm:$0xff] %vm32_vm0, %v45_v0 }
  0x21   :  { %246 = vmatpush.msra.mxu0 %v203_v34  ;;  %412 = vmatpush.msra.mxu3 %v203_v34  ;;  %v195_v1 = vld [vmem:[#allocation2 + $0x58] sm:$0xff] }
  0x22   :  { %411 = vmatpush.msra.mxu2 %v203_v34  ;;  %v189_v54 = vld [vmem:[#allocation2 + $0x28] sm:$0xff]  ;;  %v317_v34 = vadd.s32 16, %v315_v28 }
  0x23   :  { %247 = vmatpush.msra.mxu0 %v202_v35  ;;  %414 = vmatpush.msra.mxu3 %v202_v35 }
  0x24   :  { %413 = vmatpush.msra.mxu2 %v202_v35  ;;  %vm320_vm8 = vcmp.lt.s32.totalorder %v317_v34, 17 }
  0x25   :  { %248 = vmatpush.msra.mxu0 %v201_v36  ;;  %416 = vmatpush.msra.mxu3 %v201_v36  ;;  %v191_v55 = vld [vmem:[#allocation2 + $0x38] sm:$0xff] }
  0x26   :  { %415 = vmatpush.msra.mxu2 %v201_v36  ;;  %390 = vmatmul.msk.f32.gmra.mxu1 %vm32_vm0, %v187_v43  ;;  %v193_v60 = vld [vmem:[#allocation2 + $0x48] sm:$0xff] }
  0x27   :  { %170 = vrot.lane.b32.xlu1 %v385_v12, %s491_s1  ;;  %249 = vmatpush.msra.mxu0 %v200_v38 }
  0x28   :  { %97 = vrot.lane.b32.xlu2 %v91_v13, %s491_s1  ;;  %101 = vrot.lane.b32.xlu0 %v93_v14, %s491_s1 }
  0x29   :  { %418 = vmatpush.msra.mxu3 %v200_v38  ;;  %417 = vmatpush.msra.mxu2 %v200_v38 }
  0x2a   :  { %250 = vmatpush.msra.mxu0 %v199_v42 }
  0x2b   :  { %420 = vmatpush.msra.mxu3 %v199_v42  ;;  %419 = vmatpush.msra.mxu2 %v199_v42 }
  0x2c   :  { %251 = vmatpush.msra.mxu0 %v198_v44 }
  0x2d   :  { %422 = vmatpush.msra.mxu3 %v198_v44  ;;  %421 = vmatpush.msra.mxu2 %v198_v44 }
  0x2e   :  { %252 = vmatpush.msra.mxu0 %v197_v45  ;;  %391 = vmatmul.msk.f32.gmra.mxu1 %vm32_vm0, %v189_v54 }
  0x2f   :  { %79 = vrot.lane.b32.xlu1 %v72_v15, %s492_s25  ;;  %424 = vmatpush.msra.mxu3 %v197_v45 }
  0x30   :  { %99 = vrot.lane.b32.xlu2 %v92_v16, %s491_s1  ;;  %59 = vrot.lane.b32.xlu0 %v52_v17, %s493_s26  ;;  %s364_s1 = sshll.u32 %s678_s3, 4  ;;  %s365_s1 = int_to_ptr.hbm [resolvable:$true] %s364_s1 }
  0x31   :  { %423 = vmatpush.msra.mxu2 %v197_v45  ;;  %253 = vmatpush.msra.mxu0 %v196_v51 }
  0x32   :  { %426 = vmatpush.msra.mxu3 %v196_v51 }
  0x33   :  { %425 = vmatpush.msra.mxu2 %v196_v51 }
  0x36   :  { %392 = vmatmul.msk.f32.gmra.mxu1 %vm32_vm0, %v191_v55 }
  0x3e   :  { %393 = vmatmul.msk.f32.gmra.mxu1 %vm32_vm0, %v193_v60 }
  0x46   :  { %394 = vmatmul.msk.f32.gmra.mxu1 %vm32_vm0, %v195_v1 }
  0x62   :  { %v151_v40 = vpop.permute.xlu2 %150 }
  0x6a   :  { %v169_v47 = vpop.permute.xlu2 %168 }
  0x72   :  { %v58_v53 = vpop.permute.xlu2 %57 }
  0x73   :  { %67 = vst.msk [vmem:[#allocation2] sm:$0xff] %vm66_vm2, %v58_v53 }
  0x79   :  { %v167_v57 = vpop.permute.xlu1 %166 }
  0x7a   :  { %v78_v58 = vpop.permute.xlu2 %77  ;;  %v131_v59 = vpop.permute.xlu0 %130 }
  0x7b   :  { %87 = vst.msk [vmem:[#allocation2] sm:$0xff] %vm86_vm3, %v78_v58 }
  0x7c   :  { %139 = vst.msk [vmem:[#allocation2 + $0x30] sm:$0xff] %vm66_vm2, %v131_v59 }
  0x81   :  { %v133_v61 = vpop.permute.xlu1 %132 }
  0x82   :  { %140 = vst.msk [vmem:[#allocation2 + $0x40] sm:$0xff] %vm66_vm2, %v133_v61  ;;  %v149_v62 = vpop.permute.xlu0 %148  ;;  %v98_v63 = vpop.permute.xlu2 %97 }
  0x83   :  { %158 = vst.msk [vmem:[#allocation2 + $0x40] sm:$0xff] %vm86_vm3, %v151_v40 }
  0x84   :  { %157 = vst.msk [vmem:[#allocation2 + $0x30] sm:$0xff] %vm86_vm3, %v149_v62 }
  0x85   :  { %175 = vst.msk [vmem:[#allocation2 + $0x30] sm:$0xff] %vm106_vm4, %v167_v57 }
  0x86   :  { %176 = vst.msk [vmem:[#allocation2 + $0x40] sm:$0xff] %vm106_vm4, %v169_v47 }
  0x87   :  { %107 = vst.msk [vmem:[#allocation2] sm:$0xff] %vm106_vm4, %v98_v63 }
  0x89   :  { %v135_v2 = vpop.permute.xlu1 %134 }
  0x8a   :  { %141 = vst.msk [vmem:[#allocation2 + $0x50] sm:$0x1] %vm69_vm5, %v135_v2  ;;  %v62_v3 = vpop.permute.xlu0 %61  ;;  %v100_v15 = vpop.permute.xlu2 %99 }
  0x8b   :  { %70 = vst.msk [vmem:[#allocation2 + $0x20] sm:$0x1] %vm69_vm5, %v62_v3 }
  0x8c   :  { %v190_v4 = vld [vmem:[#allocation2 + $0x30] sm:$0xff] }
  0x8d   :  { %263 = vmatmul.f32.vlgmr.msra.gmra.mxu3 %v190_v4  ;;  %v192_v8 = vld [vmem:[#allocation2 + $0x40] sm:$0xff] }
  0x8e   :  { %v184_v5 = vld [vmem:[#allocation2] sm:$0xff] }
  0x8f   :  { %254 = vmatmul.f32.vlgmr.msra.gmra.mxu0 %v184_v5 }
  0x91   :  { %v153_v6 = vpop.permute.xlu1 %152 }
  0x92   :  { %159 = vst.msk [vmem:[#allocation2 + $0x50] sm:$0x1] %vm89_vm6, %v153_v6  ;;  %v82_v7 = vpop.permute.xlu0 %81 }
  0x93   :  { %90 = vst.msk [vmem:[#allocation2 + $0x20] sm:$0x1] %vm89_vm6, %v82_v7 }
  0x95   :  { %266 = vmatmul.f32.gmra.mxu3 %v192_v8 }
  0x99   :  { %v171_v9 = vpop.permute.xlu1 %170 }
  0x9a   :  { %177 = vst.msk [vmem:[#allocation2 + $0x50] sm:$0x1] %vm109_vm7, %v171_v9  ;;  %v102_v10 = vpop.permute.xlu0 %101 }
  0x9b   :  { %110 = vst.msk [vmem:[#allocation2 + $0x20] sm:$0x1] %vm109_vm7, %v102_v10  ;;  %v290_v17 = vpop.f32.mrf.mxu1 }
  0xa1   :  { %v80_v11 = vpop.permute.xlu1 %79  ;;  %v194_v12 = vld [vmem:[#allocation2 + $0x50] sm:$0xff] }
  0xa2   :  { %v60_v13 = vpop.permute.xlu0 %59  ;;  %v188_v14 = vld [vmem:[#allocation2 + $0x20] sm:$0xff]  ;;  %269 = vmatmul.f32.gmra.mxu3 %v194_v12 }
  0xa3   :  { %68 = vst.msk [vmem:[#allocation2 + $0x10] sm:$0xff] %vm66_vm2, %v60_v13  ;;  %260 = vmatmul.f32.vlgmr.msra.gmra.mxu2 %v188_v14  ;;  %v293_v18 = vpop.f32.mrf.mxu1 }
  0xa4   :  { %88 = vst.msk [vmem:[#allocation2 + $0x10] sm:$0xff] %vm86_vm3, %v80_v11 }
  0xa5   :  { %108 = vst.msk [vmem:[#allocation2 + $0x10] sm:$0xff] %vm106_vm4, %v100_v15 }
  0xab   :  { %v296_v19 = vpop.f32.mrf.mxu1 }
  0xac   :  { %v186_v16 = vld [vmem:[#allocation2 + $0x10] sm:$0xff] }
  0xad   :  { %257 = vmatmul.f32.gmra.mxu0 %v186_v16 }
  0xb3   :  { %v299_v21 = vpop.f32.mrf.mxu1 }
  0xbb   :  { %v302_v23 = vpop.f32.mrf.mxu1 }
  0xc3   :  { %v305_v33 = vpop.f32.mrf.mxu1 }
 0x10c   :  { %v255_v26 = vpop.f32.mrf.mxu0 }
 0x10d   :  { %v256_v29 = vadd.f32 %v435_v25, %v255_v26 }
 0x10f   :  { %v291_v35 = vadd.f32 %v290_v17, %v256_v29 }
 0x110   :  { %v264_v20 = vpop.f32.mrf.mxu3 }
 0x111   :  { %v265_v27 = vadd.f32 %v435_v25, %v264_v20  ;;  %v308_v43 = vmax.f32 %v291_v35, 0.0 }
 0x113   :  { %v300_v31 = vadd.f32 %v299_v21, %v265_v27  ;;  %v328_v54 = vsel %vm327_vm9, %v308_v43, -inf }
 0x115   :  { %v311_v41 = vmax.f32 %v300_v31, 0.0 }
 0x117   :  { %v339_v50 = vsel %vm327_vm9, %v311_v41, -inf }
 0x118   :  { %v267_v22 = vpop.f32.mrf.mxu3 }
 0x119   :  { %v268_v30 = vadd.f32 %v435_v25, %v267_v22 }
 0x11b   :  { %v303_v38 = vadd.f32 %v302_v23, %v268_v30 }
 0x11d   :  { %v312_v46 = vmax.f32 %v303_v38, 0.0 }
 0x11f   :  { %v340_v57 = vsel %vm327_vm9, %v312_v46, -inf }
 0x125   :  { %v270_v32 = vpop.f32.mrf.mxu3 }
 0x126   :  { %v261_v36 = vpop.f32.mrf.mxu2  ;;  %v271_v37 = vadd.f32 %v435_v25, %v270_v32 }
 0x127   :  { %v262_v39 = vadd.f32 %v435_v25, %v261_v36 }
 0x128   :  { %v306_v40 = vadd.f32 %v305_v33, %v271_v37 }
 0x129   :  { %v297_v42 = vadd.f32 %v296_v19, %v262_v39 }
 0x12a   :  { %v313_v44 = vmax.f32 %v306_v40, 0.0  ;;  %v258_v45 = vpop.f32.mrf.mxu0 }
 0x12b   :  { %v310_v47 = vmax.f32 %v297_v42, 0.0  ;;  %v259_v48 = vadd.f32 %v435_v25, %v258_v45 }
 0x12c   :  { %v326_v49 = vsel %vm320_vm8, %v313_v44, -inf }
 0x12d   :  { %v323_v51 = vsel %vm320_vm8, %v310_v47, -inf  ;;  %v341_v52 = vsel %vm327_vm9, %v326_v49, -inf  ;;  %v294_v53 = vadd.f32 %v293_v18, %v259_v48 }
 0x12e   :  { %v330_v55 = vsel %vm327_vm9, %v323_v51, -inf  ;;  %v342_v56 = vmax.f32 %v339_v50, %v341_v52 }
 0x12f   :  { %v331_v58 = vmax.f32 %v328_v54, %v330_v55  ;;  %v309_v59 = vmax.f32 %v294_v53, 0.0 }
 0x130   :  { %v343_v60 = vmax.f32 %v342_v56, %v340_v57 }
 0x131   :  { %v329_v61 = vsel %vm327_vm9, %v309_v59, -inf }
 0x132   :  { %v344_v62 = vrot.slane %v343_v60, 4  ;;  %v332_v63 = vmax.f32 %v331_v58, %v329_v61 }
 0x134   :  { %v345_v0 = vmax.f32 %v343_v60, %v344_v62  ;;  %v333_v1 = vrot.slane %v332_v63, 4 }
 0x136   :  { %v346_v2 = vrot.slane %v345_v0, 2  ;;  %v334_v3 = vmax.f32 %v332_v63, %v333_v1 }
 0x138   :  { %v347_v4 = vmax.f32 %v345_v0, %v346_v2  ;;  %v335_v5 = vrot.slane %v334_v3, 2 }
 0x13a   :  { %v336_v6 = vmax.f32 %v334_v3, %v335_v5  ;;  %v348_v7 = vrot.slane %v347_v4, 1 }
 0x13c   :  { %v337_v8 = vrot.slane %v336_v6, 1  ;;  %v349_v9 = vmax.f32 %v347_v4, %v348_v7 }
 0x13e   :  { %v338_v10 = vmax.f32 %v336_v6, %v337_v8 }
 0x140   :  { %v353_v11 = vsel %vm352_vm10, %v349_v9, %v338_v10 }
 0x141   :  { %356 = vst.msk [vmem:[#allocation6] sm:$0x3] %vm355_vm11, %v353_v11 }
 0x142   :  { %367 = dma.vmem_to_hbm [thread:$0]  %s363_s29, 32, %s365_s1, [#allocation5]  }
 0x143   :  { %486 = dma.done.wait [#allocation5], 32  }
 0x144   :  { %487 = vsyncadd [#allocation5], 4294967264 }
 0x145   :  { %372 = vsyncpa [#allocation4], 1 }
 0x146   :  { %373 = vsyncpa [#allocation5], 1 }

</bundles_post_ra>
